<compile_context>
chip_gen: v7x
topology: tpu7x:2x2x1
jax: 0.10.0
libtpu: 0.0.40
codegen_flags: <defaults>
</compile_context>

<pallas_src>
import functools

import jax
import jax.numpy as jnp
from jax.experimental import pallas as pl
from jax.experimental.pallas import tpu as pltpu


def _round_up(x, m):
    return ((x + m - 1) // m) * m


def _cdiv(a, b):
    return -(-a // b)


def _balanced_tile(extent, cap, align):
    """Aligned tile size <= ~cap that balances tiles across the extent
    (minimizes padding waste instead of padding up to a full cap-sized tile)."""
    extent_aligned = _round_up(extent, align)
    if extent_aligned <= cap:
        return extent_aligned
    n_tiles = _cdiv(extent_aligned, cap)
    return _round_up(_cdiv(extent_aligned, n_tiles), align)


def _vmem_limit_bytes(footprint_bytes):
    """Per-generation VMEM budget; never below the double-buffered footprint."""
    try:
        physical = int(pltpu.get_tpu_info().vmem_capacity_bytes)
    except Exception:  # pragma: no cover - fall back if query unavailable
        physical = 64 << 20  # conservative: v7x per-TC physical VMEM
    cap = (physical * 3) // 4  # leave headroom for compiler scratch
    limit = min(max(2 * footprint_bytes, 8 << 20), cap)
    return int(max(limit, footprint_bytes + (2 << 20)))


# ---------------------------------------------------------------------------
# Kernels
# ---------------------------------------------------------------------------
def _fc_kernel_single_k(x_ref, w_ref, b_ref, o_ref):
    # Single K tile: no accumulator scratch, no branches.
    y = jnp.dot(x_ref[...], w_ref[...], preferred_element_type=jnp.float32)
    o_ref[...] = jnp.maximum(y + b_ref[...], 0.0).astype(o_ref.dtype)


def _fc_kernel_multi_k(x_ref, w_ref, b_ref, o_ref, acc_ref):
    # x_ref: (tm, tk), w_ref: (tk, tn) [pre-transposed], b_ref: (1, tn),
    # o_ref: (tm, tn), acc_ref: (tm, tn) f32 scratch.
    k = pl.program_id(2)
    part = jnp.dot(x_ref[...], w_ref[...], preferred_element_type=jnp.float32)

    @pl.when(k == 0)
    def _():
        acc_ref[...] = part  # first step writes (no zero-fill + re-read)

    @pl.when(k > 0)
    def _():
        acc_ref[...] += part

    @pl.when(k == pl.num_programs(2) - 1)
    def _():
        y = acc_ref[...] + b_ref[...]
        o_ref[...] = jnp.maximum(y, 0.0).astype(o_ref.dtype)


# ---------------------------------------------------------------------------
# Wrapper
# ---------------------------------------------------------------------------
def prepare_fc_params(weight, bias, *, tn_max=512, tk_max=1024):
    """One-time prep (do this at init / cache it): transpose W to [in, out] and
    zero-pad to a tile-aligned [Kp, Np]; pad bias to [1, Np]."""
    out_size, in_size = weight.shape
    tn = _balanced_tile(out_size, tn_max, 128)
    tk = _balanced_tile(in_size, tk_max, 128)
    Np = _round_up(out_size, tn)
    Kp = _round_up(in_size, tk)

    w_t = weight.T  # [in_size, out_size]
    if (Kp, Np) != (in_size, out_size):
        wp = jnp.zeros((Kp, Np), weight.dtype).at[:in_size, :out_size].set(w_t)
    else:
        wp = w_t
    if Np != out_size:
        bp = jnp.zeros((1, Np), bias.dtype).at[0, :out_size].set(bias)
    else:
        bp = bias.reshape(1, Np)
    return wp, bp, int(out_size), int(tn), int(tk)


@functools.partial(jax.jit, static_argnames=("out_size", "tn", "tk", "tm_max"))
def _fc_forward_padded(x, w_padded, b_padded, *, out_size, tn, tk, tm_max=512):
    batch, in_size = x.shape
    Kp, Np = w_padded.shape

    tm = _balanced_tile(batch, tm_max, 8)
    Mp = _round_up(batch, tm)

    # Pad x only when needed (static shape check -> no-op for aligned shapes).
    if (Mp, Kp) != (batch, in_size):
        xp = jnp.zeros((Mp, Kp), x.dtype).at[:batch, :in_size].set(x)
    else:
        xp = x

    nk = Kp // tk
    itemsize = jnp.dtype(x.dtype).itemsize
    footprint = (
        2 * (tm * tk + tk * tn + tn) * itemsize  # double-buffered inputs
        + 2 * tm * tn * itemsize                 # double-buffered output
        + (tm * tn * 4 if nk > 1 else 0)         # f32 accumulator scratch
    )
    vmem_limit = _vmem_limit_bytes(footprint)
    cost = pl.CostEstimate(
        flops=2 * Mp * Np * Kp,
        transcendentals=0,
        bytes_accessed=(Mp * Kp + Kp * Np + Mp * Np + Np) * itemsize,
    )

    if nk == 1:
        # Single-K fast path: no scratch, no reduction axis.
        out = pl.pallas_call(
            _fc_kernel_single_k,
            out_shape=jax.ShapeDtypeStruct((Mp, Np), x.dtype),
            grid_spec=pltpu.PrefetchScalarGridSpec(
                num_scalar_prefetch=0,
                grid=(Mp // tm, Np // tn),
                in_specs=[
                    pl.BlockSpec((tm, tk), lambda i, j: (i, 0)),  # x tile
                    pl.BlockSpec((tk, tn), lambda i, j: (0, j)),  # W^T tile
                    pl.BlockSpec((1, tn), lambda i, j: (0, j)),   # bias tile
                ],
                out_specs=pl.BlockSpec((tm, tn), lambda i, j: (i, j)),
            ),
            compiler_params=pltpu.CompilerParams(
                dimension_semantics=("parallel", "parallel"),
                vmem_limit_bytes=vmem_limit,
            ),
            cost_estimate=cost,
        )(xp, w_padded, b_padded)
    else:
        out = pl.pallas_call(
            _fc_kernel_multi_k,
            out_shape=jax.ShapeDtypeStruct((Mp, Np), x.dtype),
            grid_spec=pltpu.PrefetchScalarGridSpec(
                num_scalar_prefetch=0,
                grid=(Mp // tm, Np // tn, nk),
                in_specs=[
                    pl.BlockSpec((tm, tk), lambda i, j, k: (i, k)),  # x tile
                    pl.BlockSpec((tk, tn), lambda i, j, k: (k, j)),  # W^T tile
                    pl.BlockSpec((1, tn), lambda i, j, k: (0, j)),   # bias tile
                ],
                out_specs=pl.BlockSpec((tm, tn), lambda i, j, k: (i, j)),
                scratch_shapes=[pltpu.VMEM((tm, tn), jnp.float32)],
            ),
            compiler_params=pltpu.CompilerParams(
                dimension_semantics=("parallel", "parallel", "arbitrary"),
                vmem_limit_bytes=vmem_limit,
            ),
            cost_estimate=cost,
        )(xp, w_padded, b_padded)

    # Slice off padding only when it exists (static check).
    if (Mp, Np) != (batch, out_size):
        out = out[:batch, :out_size]
    return out


def fc_apply(x, fc_params, *, tm_max=512):
    """relu(x @ W^T + b) using pre-prepared (transposed + padded) params."""
    wp, bp, out_size, tn, tk = fc_params
    return _fc_forward_padded(
        x, wp, bp, out_size=out_size, tn=tn, tk=tk, tm_max=tm_max
    )


def fc_forward(x, weight, bias, *, tm_max=512, tn_max=512, tk_max=1024):
    """One-shot convenience (re-preps weight every call; prefer
    prepare_fc_params() once + fc_apply() in real use)."""
    params = prepare_fc_params(weight, bias, tn_max=tn_max, tk_max=tk_max)
    return fc_apply(x, params, tm_max=tm_max)


def init_fc_params(key, in_size, out_size, dtype=jnp.float32):
    """Deterministic init matching nn.Linear defaults: U(-1/sqrt(in), 1/sqrt(in))."""
    kw, kb = jax.random.split(key)
    bound = 1.0 / jnp.sqrt(jnp.array(in_size, dtype))
    weight = jax.random.uniform(
        kw, (out_size, in_size), dtype, minval=-bound, maxval=bound
    )
    bias = jax.random.uniform(kb, (out_size,), dtype, minval=-bound, maxval=bound)
    return weight, bias


if __name__ == "__main__":
    key = jax.random.PRNGKey(0)
    kx, kp, kx2, kp2 = jax.random.split(key, 4)

    # Demo shapes consistent with the gru_imdb FC head.
    batch, in_size, out_size = 8, 32, 64
    x = jax.random.normal(kx, (batch, in_size), dtype=jnp.float32)
    weight, bias = init_fc_params(kp, in_size, out_size)

    params = prepare_fc_params(weight, bias)        # one-time transpose + pad
    y = jax.block_until_ready(fc_apply(x, params))  # single-K fast path

    y_ref = jnp.maximum(x @ weight.T + bias, 0.0)
    assert y.shape == (batch, out_size)
    assert jnp.allclose(y, y_ref, atol=1e-5, rtol=1e-5)

    # Second check: non-aligned shapes with a multi-step K reduction to
    # exercise the accumulator (pl.when) path and balanced tiling.
    b2, i2, o2 = 13, 300, 200
    x2 = jax.random.normal(kx2, (b2, i2), dtype=jnp.float32)
    w2, bias2 = init_fc_params(kp2, i2, o2)
    params2 = prepare_fc_params(w2, bias2, tk_max=128)  # forces 3 K steps
    y2 = jax.block_until_ready(fc_apply(x2, params2))
    y2_ref = jnp.maximum(x2 @ w2.T + bias2, 0.0)
    assert y2.shape == (b2, o2)
    assert jnp.allclose(y2, y2_ref, atol=1e-4, rtol=1e-4)

    print("KERNEL_OK")
</pallas_src>

<mosaic_0001>
module attributes {stable_mosaic.version = 11 : i64} {
  func.func @_fc_kernel_single_k(%arg0: i32, %arg1: i32, %arg2: memref<8x128xf32, #tpu.memory_space<vmem>>, %arg3: memref<128x128xf32, #tpu.memory_space<vmem>>, %arg4: memref<1x128xf32, #tpu.memory_space<vmem>>, %arg5: memref<8x128xf32, #tpu.memory_space<vmem>>) attributes {dimension_semantics = [#tpu.dimension_semantics<parallel>, #tpu.dimension_semantics<parallel>], iteration_bounds = array<i64: 1, 1>, scalar_prefetch = 0 : i64, scratch_operands = 0 : i64, tpu.core_type = #tpu.core_type<tc>, window_params = [{transform_indices = @transform_0, window_bounds = array<i64: 8, 128>}, {transform_indices = @transform_1, window_bounds = array<i64: 128, 128>}, {transform_indices = @transform_2, window_bounds = array<i64: 1, 128>}, {transform_indices = @transform_3, window_bounds = array<i64: 8, 128>}]} {
    %c0 = arith.constant 0 : index
    %c0_0 = arith.constant 0 : index
    %0 = vector.load %arg2[%c0, %c0_0] : memref<8x128xf32, #tpu.memory_space<vmem>>, vector<8x128xf32>
    %c0_1 = arith.constant 0 : index
    %c0_2 = arith.constant 0 : index
    %1 = vector.load %arg3[%c0_1, %c0_2] : memref<128x128xf32, #tpu.memory_space<vmem>>, vector<128x128xf32>
    %cst = arith.constant dense<0.000000e+00> : vector<8x128xf32>
    %2 = tpu.matmul %0, %1, %cst {dimension_numbers = #tpu.dot_dimension_numbers<[1], [0], [0], [1], [0, 0, 1, 1], [], []>} : vector<8x128xf32>, vector<128x128xf32>, vector<8x128xf32> -> vector<8x128xf32>
    %c0_3 = arith.constant 0 : index
    %c0_4 = arith.constant 0 : index
    %3 = vector.load %arg4[%c0_3, %c0_4] : memref<1x128xf32, #tpu.memory_space<vmem>>, vector<1x128xf32>
    %4 = vector.broadcast %3 : vector<1x128xf32> to vector<8x128xf32>
    %5 = arith.addf %2, %4 : vector<8x128xf32>
    %cst_5 = arith.constant 0.000000e+00 : f32
    %6 = vector.broadcast %cst_5 : f32 to vector<8x128xf32>
    %7 = arith.maximumf %5, %6 : vector<8x128xf32>
    %c0_6 = arith.constant 0 : index
    %c0_7 = arith.constant 0 : index
    %8 = vector.load %arg5[%c0_6, %c0_7] : memref<8x128xf32, #tpu.memory_space<vmem>>, vector<8x128xf32>
    tpu.vector_store %arg5[%c0_6, %c0_7], %7 {strides = array<i32>} : memref<8x128xf32, #tpu.memory_space<vmem>>, vector<8x128xf32>,
    return
  }
  func.func @transform_0(%arg0: i32, %arg1: i32) -> (i32, i32) {
    %c0_i32 = arith.constant 0 : i32
    %c0_i32_0 = arith.constant 0 : i32
    return %arg0, %c0_i32 : i32, i32
  }
  func.func @transform_1(%arg0: i32, %arg1: i32) -> (i32, i32) {
    %c0_i32 = arith.constant 0 : i32
    %c0_i32_0 = arith.constant 0 : i32
    return %c0_i32, %arg1 : i32, i32
  }
  func.func @transform_2(%arg0: i32, %arg1: i32) -> (i32, i32) {
    %c0_i32 = arith.constant 0 : i32
    %c0_i32_0 = arith.constant 0 : i32
    return %c0_i32, %arg1 : i32, i32
  }
  func.func @transform_3(%arg0: i32, %arg1: i32) -> (i32, i32) {
    %c0_i32 = arith.constant 0 : i32
    return %arg0, %arg1 : i32, i32
  }
}

</mosaic_0001>

<bundles_post_ra>
// kernel: _fc_forward_padded.1
= control target key start
LH: loop header
LB: loop body
LE: loop exit
PB: predicated region body
PF: predicated region fallthrough
CT: control target
= control target key end

     0   :  { %8 = vsyncpa [#allocation3], 0  ;;  %s329_s0 = inlined_call_operand.vmem [shape: f32[8,128], index: 0, kind: input, shape index: {}]   ;;  %s330_s1 = inlined_call_operand.hbm [shape: f32[128,128], index: 1, kind: input, shape index: {}]   ;;  %s331_s2 = inlined_call_operand.vmem [shape: f32[1,128], index: 2, kind: input, shape index: {}]   ;;  %s332_s3 = inlined_call_operand.hbm [shape: f32[8,128], index: 3, kind: output, shape index: {}]  }
   0x1   :  { %9 = vsyncpa [#allocation4], 0  ;;  %s272_s12 = smov [#allocation2]   ;;  %s224_s16 = scalar_lea.hbm %s330_s1, 2048 }
   0x2   :  { %s17_s13 = sshll.u32 %s272_s12, 4  ;;  %p225_p0 = scmp.ne.s32.totalorder %s330_s1, %s224_s16  ;;  %s18_s13 = int_to_ptr.vmem [resolvable:$true] %s17_s13 }
   0x3   :  { %p228_p1 = scmp.lt.u32.totalorder %s224_s16, %s330_s1 }
   0x5   :  { %p230_p2 = pnand %p228_p1, %p225_p0 }
   0x7   :  { %233 = shalt.err (!%p230_p2)
}
   0x8   :  { %s234_s21 = scalar_lea.vmem %s18_s13, 2048  ;;  %p239_p4 = scmp.lt.s32.totalorder %s18_s13, %s18_s13 }
   0x9   :  { %p235_p3 = scmp.ne.s32.totalorder %s18_s13, %s234_s21  ;;  %p240_p5 = scmp.lt.s32.totalorder %s234_s21, %s234_s21 }
   0xb   :  { %p241_p6 = por %p240_p5, %p239_p4 }
   0xd   :  { %p242_p7 = pnand %p241_p6, %p235_p3 }
   0xf   :  { %245 = shalt.err (!%p242_p7)
}
  0x10   :  { %s273_s22 = smov 128   ;;  %s274_s23 = smov 8  }
  0x11   :  { %23 = dma.hbm_to_vmem [thread:$0]  %s330_s1, 2048, %s18_s13, [#allocation3], %s273_s22, %s273_s22, %s274_s23  }
  0x12   :  { %268 = dma.done.wait [#allocation3], 2048  }
  0x13   :  { %269 = vsyncadd [#allocation3], 4294965248  ;;  %v275_v0 = vmov 0.0|0.0   ;;  %vm276_vm0 = vmmov 0   ;;  %v277_v1 = vmov 0.0   ;;  %v30_v2 = vld [vmem:[#allocation2] sm:$0xff] }
  0x14   :  { %193 = vmatprep.subr.bf16.mxu0 %v275_v0  ;;  %190 = vmatprep.mubr.msk.f32.mxu0 %vm276_vm0, %v277_v1  ;;  %v31_v3 = vld [vmem:[#allocation2 + $0x8] sm:$0xff]  ;;  %v32_v4 = vld [vmem:[#allocation2 + $0x10] sm:$0xff]  ;;  %v33_v6 = vld [vmem:[#allocation2 + $0x18] sm:$0xff]  ;;  %s278_s29 = smov [#allocation5]  }
  0x15   :  { %v194_v5 = vpack.c.bf16 %v31_v3, %v30_v2  ;;  %v197_v7 = vpack.c.bf16 %v33_v6, %v32_v4  ;;  %v34_v8 = vld [vmem:[#allocation2 + $0x20] sm:$0xff]  ;;  %v35_v9 = vld [vmem:[#allocation2 + $0x28] sm:$0xff]  ;;  %v36_v11 = vld [vmem:[#allocation2 + $0x30] sm:$0xff]  ;;  %s131_s30 = sshll.u32 %s278_s29, 4  ;;  %s132_s30 = int_to_ptr.vmem [resolvable:$true] %s131_s30 }
  0x16   :  { %v200_v10 = vpack.c.bf16 %v35_v9, %v34_v8  ;;  %v37_v12 = vld [vmem:[#allocation2 + $0x38] sm:$0xff]  ;;  %v38_v14 = vld [vmem:[#allocation2 + $0x40] sm:$0xff]  ;;  %v39_v15 = vld [vmem:[#allocation2 + $0x48] sm:$0xff]  ;;  %s246_s4 = scalar_lea.vmem %s132_s30, 128  ;;  %p251_p9 = scmp.lt.s32.totalorder %s132_s30, %s132_s30 }
  0x17   :  { %195 = vmatpush3.bf16.msra.mxu0 %v194_v5  ;;  %v203_v13 = vpack.c.bf16 %v37_v12, %v36_v11  ;;  %v206_v16 = vpack.c.bf16 %v39_v15, %v38_v14  ;;  %v40_v17 = vld [vmem:[#allocation2 + $0x50] sm:$0xff]  ;;  %v41_v18 = vld [vmem:[#allocation2 + $0x58] sm:$0xff]  ;;  %v42_v20 = vld [vmem:[#allocation2 + $0x60] sm:$0xff]  ;;  %p247_p8 = scmp.ne.s32.totalorder %s132_s30, %s246_s4  ;;  %p252_p10 = scmp.lt.s32.totalorder %s246_s4, %s246_s4 }
  0x18   :  { %196 = vmatprep.subr.bf16.mxu0 %v275_v0  ;;  %v209_v19 = vpack.c.bf16 %v41_v18, %v40_v17  ;;  %v43_v21 = vld [vmem:[#allocation2 + $0x68] sm:$0xff]  ;;  %v44_v23 = vld [vmem:[#allocation2 + $0x70] sm:$0xff]  ;;  %v45_v24 = vld [vmem:[#allocation2 + $0x78] sm:$0xff] }
  0x19   :  { %v212_v22 = vpack.c.bf16 %v43_v21, %v42_v20  ;;  %v215_v25 = vpack.c.bf16 %v45_v24, %v44_v23  ;;  %v29_v26 = vld [vmem:[%s329_s0] sm:$0xff]  ;;  %p253_p11 = por %p252_p10, %p251_p9 }
  0x1a   :  { %v140_v27 = vld [vmem:[%s331_s2] ss:$0 sm:$0xff] }
  0x1b   :  { %198 = vmatpush3.bf16.msra.mxu0 %v197_v7  ;;  %p254_p12 = pnand %p253_p11, %p247_p8 }
  0x1c   :  { %199 = vmatprep.subr.bf16.mxu0 %v275_v0 }
  0x1f   :  { %201 = vmatpush3.bf16.msra.mxu0 %v200_v10 }
  0x20   :  { %202 = vmatprep.subr.bf16.mxu0 %v275_v0 }
  0x23   :  { %204 = vmatpush3.bf16.msra.mxu0 %v203_v13 }
  0x24   :  { %205 = vmatprep.subr.bf16.mxu0 %v275_v0 }
  0x27   :  { %207 = vmatpush3.bf16.msra.mxu0 %v206_v16 }
  0x28   :  { %208 = vmatprep.subr.bf16.mxu0 %v275_v0 }
  0x2b   :  { %210 = vmatpush3.bf16.msra.mxu0 %v209_v19 }
  0x2c   :  { %211 = vmatprep.subr.bf16.mxu0 %v275_v0 }
  0x2f   :  { %213 = vmatpush3.bf16.msra.mxu0 %v212_v22 }
  0x30   :  { %214 = vmatprep.subr.bf16.mxu0 %v275_v0 }
  0x33   :  { %216 = vmatpush3.bf16.msra.mxu0 %v215_v25 }
  0x36   :  { %191 = vmatmul.mubr.f32.vlgmr.msra.gmra.mrb[0].mxu0 %v29_v26 }
 0x109   :  { %v119_v28 = vpop.f32.mrb[0].mxu0 }
 0x10a   :  { %v120_v29 = vadd.f32 %v140_v27, %v119_v28  ;;  %v192_v30 = vpop.f32.mrb[1].mxu0 }
 0x10c   :  { %v123_v31 = vmax.f32 %v120_v29, 0.0 }
 0x10e   :  { %124 = vst [vmem:[#allocation5] sm:$0xff] %v123_v31 }
 0x10f   :  { %257 = shalt.err (!%p254_p12)
}
 0x110   :  { %s258_s6 = scalar_lea.hbm %s332_s3, 128 }
 0x111   :  { %p259_p13 = scmp.ne.s32.totalorder %s332_s3, %s258_s6  ;;  %p262_p0 = scmp.lt.u32.totalorder %s258_s6, %s332_s3 }
 0x113   :  { %p264_p1 = pnand %p262_p0, %p259_p13 }
 0x115   :  { %267 = shalt.err (!%p264_p1)
}
 0x116   :  { %134 = dma.vmem_to_hbm [thread:$0]  %s132_s30, 128, %s332_s3, [#allocation4]  }
 0x117   :  { %270 = dma.done.wait [#allocation4], 128  }
 0x118   :  { %271 = vsyncadd [#allocation4], 4294967168 }
 0x119   :  { %138 = vsyncpa [#allocation3], 1 }
 0x11a   :  { %139 = vsyncpa [#allocation4], 1 }

</bundles_post_ra>
